<compile_context>
chip_gen: v5e
topology: v5e:2x2
jax: 0.10.0
libtpu: 0.0.40
codegen_flags: <defaults>
</compile_context>

<pallas_src>
import functools

import jax
import jax.numpy as jnp
from jax.experimental import pallas as pl
from jax.experimental.pallas import tpu as pltpu


# ----------------------------- Pallas kernel -------------------------------

def rl_agent_kernel(xin_ref, w1emb_ref, consts_ref, w2_ref, w3a_ref, out_ref):
    n = w1emb_ref.shape[1]          # num_agents
    tb = xin_ref.shape[1]           # batch tile (lane dimension)

    # Packed per-batch inputs: row 0 = agent_id (as f32), 1 = sign, 2 = order.
    xin = xin_ref[...]                                    # [3, TB] f32
    ids = xin[0:1, :]
    sign = xin[1:2, :]
    order = xin[2:3, :]

    # Packed small constants: col 0 = b1, col 1 = b2, col 2 = b3, col 3 = w3b.
    consts = consts_ref[...]                              # [64, 4] f32
    b1 = consts[:, 0:1]                                   # [64, 1]
    b2 = consts[0:16, 1:2]                                # [16, 1]
    b3 = consts[0:4, 2:3]                                 # [4, 1]
    w3b = consts[0:4, 3:4]                                # [4, 1]

    # Signed one-hot selector, already transposed: sel[a, b] = sign[b] iff
    # a == id[b].  sign is +/-1 so the bf16 cast is exact.
    # TODO(synk): for large num_agents switch this O(B*N) one-hot matmul to a
    # DMA/gather-based embedding lookup.
    row = jax.lax.broadcasted_iota(jnp.int32, (n, tb), 0)
    sel = jnp.where(row == ids.astype(jnp.int32), sign, 0.0).astype(jnp.bfloat16)

    # Embedding lookup + linear_1 folded into one matmul (table precomputed in
    # f32 offline):  h1^T = (W1 @ E^T) @ sel^T + b1   -> [64, TB]
    h1 = jnp.dot(w1emb_ref[...], sel,
                 preferred_element_type=jnp.float32) + b1
    h1 = jnp.maximum(h1, 0.0)

    # linear_2 + ReLU:  [16, 64] @ [64, TB]
    h2 = jnp.dot(w2_ref[...], h1.astype(jnp.bfloat16),
                 preferred_element_type=jnp.float32) + b2
    h2 = jnp.maximum(h2, 0.0)

    # linear_3 over cat([h2, order], 1), decomposed exactly:
    #   [4, 16] @ [16, TB]  +  [4, 1] * [1, TB]  +  [4, 1]
    out = (jnp.dot(w3a_ref[...], h2.astype(jnp.bfloat16),
                   preferred_element_type=jnp.float32)
           + w3b * order + b3)
    out_ref[...] = out                                    # lane-dense [4, TB]


# ----------------------- one-time parameter preparation ---------------------

def prepare_params(params):
    """Hoisted out of the per-call path: fold emb@W1^T (in f32), pack biases."""
    # Fold: h1^T = W1 @ (sign * emb[id])^T + b1 = (W1 @ E^T) @ sel^T + b1.
    # Contraction over 128 is done here once in f32, then cast to bf16.
    w1emb = (params["w1"].astype(jnp.float32)
             @ params["emb"].astype(jnp.float32).T)       # [64, N]

    consts = jnp.zeros((64, 4), jnp.float32)
    consts = consts.at[:, 0].set(params["b1"].astype(jnp.float32))
    consts = consts.at[:16, 1].set(params["b2"].astype(jnp.float32))
    consts = consts.at[:4, 2].set(params["b3"].astype(jnp.float32))
    consts = consts.at[:4, 3].set(params["w3"][:, 16].astype(jnp.float32))

    return {
        "w1emb": w1emb.astype(jnp.bfloat16),               # [64, N]
        "consts": consts,                                  # [64, 4] f32
        "w2": params["w2"].astype(jnp.bfloat16),           # [16, 64]
        "w3a": params["w3"][:, :16].astype(jnp.bfloat16),  # [4, 16]
    }


# ------------------------------- tiling -------------------------------------

def _round_up(x, m):
    return ((x + m - 1) // m) * m


def _choose_tiling(B, tb=None):
    """Pick (tile_batch, n_tiles).  With >1 tile the batch tile (lane dim) must
    be a multiple of 128; keep the tile count even so both v7x TensorCores get
    balanced work (on v5e/v6e a single big tile is best)."""
    if tb is not None:
        if tb >= B:
            return _round_up(max(B, 1), 8), 1
        tb = _round_up(tb, 128)
        n_tiles = -(-B // tb)
    elif B <= 2048:
        return _round_up(max(B, 1), 8), 1
    else:
        tb = min(8192, _round_up(-(-B // 2), 128))
        n_tiles = -(-B // tb)
    if n_tiles > 1 and n_tiles % 2 == 1:
        n_tiles += 1        # extra (padded) tile keeps the two cores balanced
    return tb, n_tiles


# ------------------------------- wrapper ------------------------------------

@functools.partial(jax.jit, static_argnames=("tb",))
def rl_agent_forward(prepared, agent_id, is_majority, order_no, *, tb=None):
    """prepared: output of prepare_params; agent_id [B] int; is_majority [B];
    order_no [B, 1].  Returns [B, 4] f32."""
    B = agent_id.shape[0]
    n = prepared["w1emb"].shape[1]

    tb_, n_tiles = _choose_tiling(B, tb)
    b_pad = tb_ * n_tiles
    pad = b_pad - B

    # One packed streamed operand: [3, B_pad] (id-as-f32, sign, order rows).
    xin = jnp.stack([agent_id.astype(jnp.float32),
                     is_majority.astype(jnp.float32),
                     order_no.reshape(-1).astype(jnp.float32)], axis=0)
    if pad:
        xin = jnp.pad(xin, ((0, 0), (0, pad)))

    streamed = lambda r: pl.BlockSpec((r, tb_), lambda i: (0, i))
    resident = lambda s: pl.BlockSpec(s, lambda i: (0, 0))

    out_t = pl.pallas_call(
        rl_agent_kernel,
        out_shape=jax.ShapeDtypeStruct((4, b_pad), jnp.float32),
        grid=(n_tiles,),
        in_specs=[
            streamed(3),              # packed id/sign/order
            resident((64, n)),        # W1 @ E^T   (bf16)
            resident((64, 4)),        # packed b1 | b2 | b3 | w3b (f32)
            resident((16, 64)),       # W2         (bf16)
            resident((4, 16)),        # W3[:, :16] (bf16)
        ],
        out_specs=streamed(4),        # lane-dense [4, TB] output tile
        compiler_params=pltpu.CompilerParams(
            dimension_semantics=("parallel",)),
    )(xin, prepared["w1emb"], prepared["consts"], prepared["w2"],
      prepared["w3a"])

    # Padded tail columns hold garbage and are sliced off here.
    return out_t[:, :B].T


# --------------------------- pure-JAX reference ------------------------------

def rl_agent_reference(params, agent_id, is_majority, order_no):
    embeds = params["emb"][agent_id]                       # [B, 128]
    signed = embeds * is_majority.reshape(-1, 1)
    h1 = jax.nn.relu(signed @ params["w1"].T + params["b1"])
    h2 = jax.nn.relu(h1 @ params["w2"].T + params["b2"])
    cat = jnp.concatenate([h2, order_no], axis=1)          # [B, 17]
    return cat @ params["w3"].T + params["b3"]


# ----------------------------------- main ------------------------------------

def init_params(key, num_agents):
    ks = jax.random.split(key, 7)

    def uniform(k, shape, fan_in):
        bound = 1.0 / jnp.sqrt(fan_in)
        return jax.random.uniform(k, shape, jnp.float32, -bound, bound)

    return {
        "emb": jax.random.normal(ks[0], (num_agents, 128), jnp.float32),
        "w1": uniform(ks[1], (64, 128), 128.0),
        "b1": uniform(ks[2], (64,), 128.0),
        "w2": uniform(ks[3], (16, 64), 64.0),
        "b2": uniform(ks[4], (16,), 64.0),
        "w3": uniform(ks[5], (4, 17), 17.0),
        "b3": uniform(ks[6], (4,), 17.0),
    }


if __name__ == "__main__":
    num_agents = 8
    params = init_params(jax.random.PRNGKey(0), num_agents)
    prepared = prepare_params(params)

    def make_inputs(key, batch):
        k_id, k_maj, k_ord = jax.random.split(key, 3)
        agent_id = jax.random.randint(k_id, (batch,), 0, num_agents,
                                      dtype=jnp.int32)
        is_majority = jnp.where(jax.random.bernoulli(k_maj, 0.5, (batch,)),
                                1.0, -1.0).astype(jnp.float32)
        order_no = jax.random.uniform(k_ord, (batch, 1), dtype=jnp.float32)
        return agent_id, is_majority, order_no

    # Small single-tile case (module-consistent shapes: batch=2).
    a, m, o = make_inputs(jax.random.PRNGKey(1), 2)
    out = jax.block_until_ready(rl_agent_forward(prepared, a, m, o))
    ref = rl_agent_reference(params, a, m, o)
    assert out.shape == (2, 4)
    # bf16 matmul operands (f32 accumulate / f32 folded table) -> loose tol.
    assert jnp.allclose(out, ref, atol=2e-2, rtol=2e-2), (out, ref)

    # Multi-tile streamed path (128-lane tiles, odd count padded to even).
    a, m, o = make_inputs(jax.random.PRNGKey(2), 300)
    out = jax.block_until_ready(rl_agent_forward(prepared, a, m, o, tb=128))
    ref = rl_agent_reference(params, a, m, o)
    assert out.shape == (300, 4)
    assert jnp.allclose(out, ref, atol=2e-2, rtol=2e-2), (out, ref)

    print("KERNEL_OK")
</pallas_src>

<mosaic_0001>
module attributes {stable_mosaic.version = 11 : i64} {
  func.func @rl_agent_kernel(%arg0: i32, %arg1: memref<3x8xf32, #tpu.memory_space<vmem>>, %arg2: memref<64x8xbf16, #tpu.memory_space<vmem>>, %arg3: memref<64x4xf32, #tpu.memory_space<vmem>>, %arg4: memref<16x64xbf16, #tpu.memory_space<vmem>>, %arg5: memref<4x16xbf16, #tpu.memory_space<vmem>>, %arg6: memref<4x8xf32, #tpu.memory_space<vmem>>) attributes {dimension_semantics = [#tpu.dimension_semantics<parallel>], iteration_bounds = array<i64: 1>, scalar_prefetch = 0 : i64, scratch_operands = 0 : i64, tpu.core_type = #tpu.core_type<tc>, window_params = [{transform_indices = @transform_0, window_bounds = array<i64: 3, 8>}, {pipeline_mode = #tpu.pipeline_mode<synchronous>, transform_indices = @transform_1, window_bounds = array<i64: 64, 8>}, {pipeline_mode = #tpu.pipeline_mode<synchronous>, transform_indices = @transform_2, window_bounds = array<i64: 64, 4>}, {pipeline_mode = #tpu.pipeline_mode<synchronous>, transform_indices = @transform_3, window_bounds = array<i64: 16, 64>}, {pipeline_mode = #tpu.pipeline_mode<synchronous>, transform_indices = @transform_4, window_bounds = array<i64: 4, 16>}, {transform_indices = @transform_5, window_bounds = array<i64: 4, 8>}]} {
    %c0 = arith.constant 0 : index
    %c0_0 = arith.constant 0 : index
    %0 = vector.load %arg1[%c0, %c0_0] : memref<3x8xf32, #tpu.memory_space<vmem>>, vector<3x8xf32>
    %1 = vector.extract_strided_slice %0 {offsets = [0, 0], sizes = [1, 8], strides = [1, 1]} : vector<3x8xf32> to vector<1x8xf32>
    %2 = vector.extract_strided_slice %0 {offsets = [1, 0], sizes = [1, 8], strides = [1, 1]} : vector<3x8xf32> to vector<1x8xf32>
    %3 = vector.extract_strided_slice %0 {offsets = [2, 0], sizes = [1, 8], strides = [1, 1]} : vector<3x8xf32> to vector<1x8xf32>
    %c0_1 = arith.constant 0 : index
    %c0_2 = arith.constant 0 : index
    %4 = vector.load %arg3[%c0_1, %c0_2] : memref<64x4xf32, #tpu.memory_space<vmem>>, vector<64x4xf32>
    %5 = vector.extract_strided_slice %4 {offsets = [0, 0], sizes = [64, 1], strides = [1, 1]} : vector<64x4xf32> to vector<64x1xf32>
    %6 = vector.extract_strided_slice %4 {offsets = [0, 1], sizes = [16, 1], strides = [1, 1]} : vector<64x4xf32> to vector<16x1xf32>
    %7 = vector.extract_strided_slice %4 {offsets = [0, 2], sizes = [4, 1], strides = [1, 1]} : vector<64x4xf32> to vector<4x1xf32>
    %8 = vector.extract_strided_slice %4 {offsets = [0, 3], sizes = [4, 1], strides = [1, 1]} : vector<64x4xf32> to vector<4x1xf32>
    %9 = tpu.iota {dimensions = array<i32: 0>} : vector<8x8xi32>
    %10 = arith.fptosi %1 : vector<1x8xf32> to vector<1x8xi32>
    %11 = vector.broadcast %10 : vector<1x8xi32> to vector<8x8xi32>
    %12 = arith.cmpi eq, %9, %11 : vector<8x8xi32>
    %cst = arith.constant 0.000000e+00 : f32
    %13 = vector.shape_cast %2 : vector<1x8xf32> to vector<1x8xf32>
    %14 = vector.broadcast %13 : vector<1x8xf32> to vector<8x8xf32>
    %15 = vector.broadcast %cst : f32 to vector<8x8xf32>
    %16 = arith.select %12, %14, %15 : vector<8x8xi1>, vector<8x8xf32>
    %17 = arith.truncf %16 : vector<8x8xf32> to vector<8x8xbf16>
    %c0_3 = arith.constant 0 : index
    %c0_4 = arith.constant 0 : index
    %18 = vector.load %arg2[%c0_3, %c0_4] : memref<64x8xbf16, #tpu.memory_space<vmem>>, vector<64x8xbf16>
    %cst_5 = arith.constant dense<0.000000e+00> : vector<64x8xf32>
    %19 = tpu.matmul %18, %17, %cst_5 {dimension_numbers = #tpu.dot_dimension_numbers<[1], [0], [0], [1], [0, 0, 1, 1], [], []>} : vector<64x8xbf16>, vector<8x8xbf16>, vector<64x8xf32> -> vector<64x8xf32>
    %20 = vector.broadcast %5 : vector<64x1xf32> to vector<64x8xf32>
    %21 = arith.addf %19, %20 : vector<64x8xf32>
    %cst_6 = arith.constant 0.000000e+00 : f32
    %22 = vector.broadcast %cst_6 : f32 to vector<64x8xf32>
    %23 = arith.maximumf %21, %22 : vector<64x8xf32>
    %c0_7 = arith.constant 0 : index
    %c0_8 = arith.constant 0 : index
    %24 = vector.load %arg4[%c0_7, %c0_8] : memref<16x64xbf16, #tpu.memory_space<vmem>>, vector<16x64xbf16>
    %25 = arith.truncf %23 : vector<64x8xf32> to vector<64x8xbf16>
    %cst_9 = arith.constant dense<0.000000e+00> : vector<16x8xf32>
    %26 = tpu.matmul %24, %25, %cst_9 {dimension_numbers = #tpu.dot_dimension_numbers<[1], [0], [0], [1], [0, 0, 1, 1], [], []>} : vector<16x64xbf16>, vector<64x8xbf16>, vector<16x8xf32> -> vector<16x8xf32>
    %27 = vector.broadcast %6 : vector<16x1xf32> to vector<16x8xf32>
    %28 = arith.addf %26, %27 : vector<16x8xf32>
    %cst_10 = arith.constant 0.000000e+00 : f32
    %29 = vector.broadcast %cst_10 : f32 to vector<16x8xf32>
    %30 = arith.maximumf %28, %29 : vector<16x8xf32>
    %c0_11 = arith.constant 0 : index
    %c0_12 = arith.constant 0 : index
    %31 = vector.load %arg5[%c0_11, %c0_12] : memref<4x16xbf16, #tpu.memory_space<vmem>>, vector<4x16xbf16>
    %32 = arith.truncf %30 : vector<16x8xf32> to vector<16x8xbf16>
    %cst_13 = arith.constant dense<0.000000e+00> : vector<4x8xf32>
    %33 = tpu.matmul %31, %32, %cst_13 {dimension_numbers = #tpu.dot_dimension_numbers<[1], [0], [0], [1], [0, 0, 1, 1], [], []>} : vector<4x16xbf16>, vector<16x8xbf16>, vector<4x8xf32> -> vector<4x8xf32>
    %34 = vector.broadcast %8 : vector<4x1xf32> to vector<4x8xf32>
    %35 = vector.broadcast %3 : vector<1x8xf32> to vector<4x8xf32>
    %36 = arith.mulf %34, %35 : vector<4x8xf32>
    %37 = arith.addf %33, %36 : vector<4x8xf32>
    %38 = vector.broadcast %7 : vector<4x1xf32> to vector<4x8xf32>
    %39 = arith.addf %37, %38 : vector<4x8xf32>
    %c0_14 = arith.constant 0 : index
    %c0_15 = arith.constant 0 : index
    %40 = vector.load %arg6[%c0_14, %c0_15] : memref<4x8xf32, #tpu.memory_space<vmem>>, vector<4x8xf32>
    tpu.vector_store %arg6[%c0_14, %c0_15], %39 {strides = array<i32>} : memref<4x8xf32, #tpu.memory_space<vmem>>, vector<4x8xf32>,
    return
  }
  func.func @transform_0(%arg0: i32) -> (i32, i32) {
    %c0_i32 = arith.constant 0 : i32
    %c0_i32_0 = arith.constant 0 : i32
    return %c0_i32, %arg0 : i32, i32
  }
  func.func @transform_1(%arg0: i32) -> (i32, i32) {
    %c0_i32 = arith.constant 0 : i32
    %c0_i32_0 = arith.constant 0 : i32
    %c0_i32_1 = arith.constant 0 : i32
    return %c0_i32, %c0_i32_0 : i32, i32
  }
  func.func @transform_2(%arg0: i32) -> (i32, i32) {
    %c0_i32 = arith.constant 0 : i32
    %c0_i32_0 = arith.constant 0 : i32
    %c0_i32_1 = arith.constant 0 : i32
    return %c0_i32, %c0_i32_0 : i32, i32
  }
  func.func @transform_3(%arg0: i32) -> (i32, i32) {
    %c0_i32 = arith.constant 0 : i32
    %c0_i32_0 = arith.constant 0 : i32
    %c0_i32_1 = arith.constant 0 : i32
    return %c0_i32, %c0_i32_0 : i32, i32
  }
  func.func @transform_4(%arg0: i32) -> (i32, i32) {
    %c0_i32 = arith.constant 0 : i32
    %c0_i32_0 = arith.constant 0 : i32
    %c0_i32_1 = arith.constant 0 : i32
    return %c0_i32, %c0_i32_0 : i32, i32
  }
  func.func @transform_5(%arg0: i32) -> (i32, i32) {
    %c0_i32 = arith.constant 0 : i32
    %c0_i32_0 = arith.constant 0 : i32
    return %c0_i32, %arg0 : i32, i32
  }
}

</mosaic_0001>

<bundles_post_ra>
// kernel: rl_agent_forward.1
= control target key start
LH: loop header
LB: loop body
LE: loop exit
PB: predicated region body
PF: predicated region fallthrough
CT: control target
= control target key end

     0   :  { %v30_v1 = vlaneseq  ;;  %v284_v2 = vmov 0   ;;  %vm119_vm2 = vcmask 1043456   ;;  %vm106_vm3 = vcmask 64512   ;;  %s373_s0 = inlined_call_operand.vmem [shape: f32[3,8], index: 0, kind: input, shape index: {}]   ;;  %s374_s2 = inlined_call_operand.vmem [shape: f32[64,4], index: 2, kind: input, shape index: {}]   ;;  %s375_s1 = inlined_call_operand.vmem [shape: bf16[64,8], index: 1, kind: input, shape index: {}]   ;;  %s376_s3 = inlined_call_operand.vmem [shape: bf16[16,64], index: 3, kind: input, shape index: {}]   ;;  %s377_s4 = inlined_call_operand.vmem [shape: bf16[4,16], index: 4, kind: input, shape index: {}]   ;;  %s378_s5 = inlined_call_operand.vmem [shape: f32[4,8], index: 5, kind: output, shape index: {}]  }
   0x1   :  { %v321_v0 = vld [vmem:[%s373_s0] sm:$0x7]  ;;  %277 = vset.pattern.permute.xlu1 %v284_v2  ;;  %276 = vset.pattern.permute.xlu0 %v284_v2  ;;  %v28_v5 = vld [vmem:[%s374_s2 + $0x30] sm:$0xff]  ;;  %v29_v13 = vld [vmem:[%s374_s2 + $0x38] sm:$0xff]  ;;  %v285_v32 = vmov 1   ;;  %vm179_vm4 = vcmask 523264  }
   0x2   :  { %vm267_vm0 = vcmp.lt.s32.totalorder %v321_v0, 0  ;;  %v268_v3 = vceil.f32 %v321_v0  ;;  %v269_v4 = vfloor.f32 %v321_v0  ;;  %v26_v6 = vld [vmem:[%s374_s2 + $0x20] sm:$0xff]  ;;  %278 = vset.pattern.permute.xlu2 %v284_v2  ;;  %78 = vperm.xlu0 %276, %v28_v5   ;;  %v24_v8 = vld [vmem:[%s374_s2 + $0x10] sm:$0xff]  ;;  %v31_v9 = vshrl.u32 %v30_v1, 7  ;;  %v27_v14 = vld [vmem:[%s374_s2 + $0x28] sm:$0xff] }
   0x3   :  { %68 = vperm.xlu1 %277, %v26_v6   ;;  %58 = vperm.xlu2 %278, %v24_v8   ;;  %v35_v11 = vperm.slane %v321_v0, 1  ;;  %v25_v16 = vld [vmem:[%s374_s2 + $0x18] sm:$0xff]  ;;  %v263_v19 = vld [vmem:[%s375_s1 + $0x10] sm:$0xff]  ;;  %v261_v20 = vld [vmem:[%s375_s1] sm:$0xff]  ;;  %v286_v63 = vmov 3   ;;  %v287_v1 = vmov 2  }
   0x4   :  { %v270_v7 = vsel %vm267_vm0, %v268_v3, %v269_v4  ;;  %v23_v21 = vld [vmem:[%s374_s2 + $0x8] sm:$0xff]  ;;  %v22_v22 = vld [vmem:[%s374_s2] sm:$0xff]  ;;  %v264_v23 = vld [vmem:[%s375_s1 + $0x18] sm:$0xff]  ;;  %vm207_vm5 = vcmask 130048   ;;  %vm229_vm6 = vcmask 60416  }
   0x5   :  { %v271_v10 = vcvt.f32.s32 %v270_v7  ;;  %v262_v24 = vld [vmem:[%s375_s1 + $0x8] sm:$0xff]  ;;  %v265_v62 = vld [vmem:[%s376_s3] sm:$0xff] }
   0x7   :  { %v33_v12 = vperm.slane %v271_v10, 0 }
   0x9   :  { %vm34_vm1 = vcmp.eq.s32.totalorder %v31_v9, %v33_v12  ;;  %v205_v12 = vperm.slane %v321_v0, 2 }
   0xa   :  { %v36_v15 = vsel %vm34_vm1, %v35_v11, 0.0  ;;  %83 = vperm.xlu0 %276, %v29_v13   ;;  %v199_v11 = vld [vmem:[%s377_s4] sm:$0x3] }
   0xb   :  { %v37_v17 = vpack.c.bf16 %v36_v15, %v36_v15  ;;  %73 = vperm.xlu1 %277, %v27_v14   ;;  %63 = vperm.xlu2 %278, %v25_v16  }
   0xd   :  { %v121_v18 = vsel %vm119_vm2, %v37_v17, 0 }
   0xe   :  { %266 = vmatpush.bf16.msra.mxu3 %v121_v18  ;;  %130 = vmatpush.bf16.msra.mxu0 %v121_v18 }
  0x11   :  { %253 = vmatmul.msk.bf16.vlgmr.msra.gmra.mxu3 %vm106_vm3, %v263_v19  ;;  %251 = vmatmul.msk.bf16.vlgmr.msra.gmra.mxu0 %vm106_vm3, %v261_v20 }
  0x12   :  { %48 = vperm.xlu0 %276, %v22_v22  }
  0x13   :  { %53 = vperm.xlu1 %277, %v23_v21   ;;  %279 = vset.pattern.permute.xlu2 %v285_v32 }
  0x14   :  { %167 = vperm.xlu2 %279, %v22_v22  }
  0x1a   :  { %280 = vset.pattern.permute.xlu0 %v285_v32 }
  0x1b   :  { %171 = vperm.xlu0 %280, %v23_v21   ;;  %281 = vset.pattern.permute.xlu1 %v286_v63 }
  0x1c   :  { %282 = vset.pattern.permute.xlu2 %v287_v1  ;;  %202 = vperm.xlu1 %281, %v22_v22  }
  0x1d   :  { %225 = vperm.xlu2 %282, %v22_v22  }
  0x21   :  { %254 = vmatmul.msk.bf16.gmra.mxu3 %vm106_vm3, %v264_v23  ;;  %252 = vmatmul.msk.bf16.gmra.mxu0 %vm106_vm3, %v262_v24 }
  0x23   :  { %283 = vset.pattern.permute.xlu0 %v287_v1 }
  0x5d   :  { %v59_v31 = vpop.permute.xlu2 %58 }
  0x65   :  { %v64_v41 = vpop.permute.xlu2 %63 }
  0x6e   :  { %v168_v3 = vpop.permute.xlu2 %167 }
  0x74   :  { %v79_v29 = vpop.permute.xlu0 %78 }
  0x75   :  { %v69_v30 = vpop.permute.xlu1 %68 }
  0x77   :  { %v226_v16 = vpop.permute.xlu2 %225 }
  0x7c   :  { %v84_v35 = vpop.permute.xlu0 %83 }
  0x7d   :  { %v74_v36 = vpop.permute.xlu1 %73 }
  0x84   :  { %v49_v46 = vpop.permute.xlu0 %48 }
  0x85   :  { %v54_v51 = vpop.permute.xlu1 %53 }
  0x8d   :  { %v172_v4 = vpop.permute.xlu0 %171 }
  0x8e   :  { %v132_v25 = vpop.f32.mrf.mxu0  ;;  %v203_v13 = vpop.permute.xlu1 %202 }
  0x8f   :  { %v133_v53 = vadd.f32 %v132_v25, %v49_v46  ;;  %v206_v14 = vmul.f32 %v205_v12, %v203_v13 }
  0x91   :  { %v152_v58 = vmax.f32 %v133_v53, 0.0 }
  0x94   :  { %v142_v26 = vpop.f32.mrf.mxu3 }
  0x95   :  { %v143_v43 = vadd.f32 %v142_v26, %v69_v30 }
  0x96   :  { %v134_v27 = vpop.f32.mrf.mxu0 }
  0x97   :  { %v156_v52 = vmax.f32 %v143_v43, 0.0  ;;  %v135_v54 = vadd.f32 %v134_v27, %v54_v51 }
  0x99   :  { %v153_v59 = vmax.f32 %v135_v54, 0.0 }
  0x9b   :  { %v162_v61 = vpack.c.bf16 %v153_v59, %v152_v58 }
  0x9c   :  { %v144_v28 = vpop.f32.mrf.mxu3 }
  0x9d   :  { %v145_v39 = vadd.f32 %v144_v28, %v74_v36 }
  0x9e   :  { %v137_v33 = vpop.f32.mrf.mxu0 }
  0x9f   :  { %v157_v47 = vmax.f32 %v145_v39, 0.0  ;;  %v138_v48 = vadd.f32 %v137_v33, %v59_v31 }
  0xa1   :  { %v154_v55 = vmax.f32 %v138_v48, 0.0  ;;  %v164_v57 = vpack.c.bf16 %v157_v47, %v156_v52 }
  0xa4   :  { %v147_v34 = vpop.f32.mrf.mxu3 }
  0xa5   :  { %v148_v37 = vadd.f32 %v147_v34, %v79_v29 }
  0xa6   :  { %v139_v42 = vpop.f32.mrf.mxu0 }
  0xa7   :  { %v158_v44 = vmax.f32 %v148_v37, 0.0  ;;  %v140_v49 = vadd.f32 %v139_v42, %v64_v41 }
  0xa9   :  { %v155_v56 = vmax.f32 %v140_v49, 0.0 }
  0xab   :  { %v163_v60 = vpack.c.bf16 %v155_v56, %v154_v55 }
  0xac   :  { %v149_v38 = vpop.f32.mrf.mxu3 }
  0xad   :  { %v150_v40 = vadd.f32 %v149_v38, %v84_v35 }
  0xaf   :  { %v159_v45 = vmax.f32 %v150_v40, 0.0 }
  0xb1   :  { %v165_v50 = vpack.c.bf16 %v159_v45, %v158_v44 }
  0xb3   :  { %187 = vmatpush.bf16.msra.mxu1 %v165_v50 }
  0xb7   :  { %188 = vmatpush.bf16.msra.mxu1 %v164_v57 }
  0xbb   :  { %189 = vmatpush.bf16.msra.mxu1 %v163_v60 }
  0xbf   :  { %190 = vmatpush.bf16.msra.mxu1 %v162_v61 }
  0xc2   :  { %259 = vmatmul.msk.bf16.vlgmr.msra.gmra.mxu1 %vm179_vm4, %v265_v62 }
 0x13f   :  { %v192_v2 = vpop.f32.mrf.mxu1 }
 0x140   :  { %v193_v5 = vadd.f32 %v192_v2, %v168_v3 }
 0x142   :  { %v197_v8 = vmax.f32 %v193_v5, 0.0 }
 0x147   :  { %v194_v6 = vpop.f32.mrf.mxu1 }
 0x148   :  { %v195_v7 = vadd.f32 %v194_v6, %v172_v4 }
 0x14a   :  { %v198_v9 = vmax.f32 %v195_v7, 0.0 }
 0x14c   :  { %v200_v10 = vpack.c.bf16 %v198_v9, %v197_v8 }
 0x14e   :  { %218 = vmatpush.bf16.msra.mxu2 %v200_v10 }
 0x151   :  { %260 = vmatmul.msk.bf16.vlgmr.msra.gmra.mxu2 %vm207_vm5, %v199_v11 }
 0x1d4   :  { %v220_v15 = vpop.f32.mrf.mxu2 }
 0x1d5   :  { %v221_v17 = vadd.f32 %v220_v15, %v206_v14 }
 0x1d7   :  { %v228_v18 = vadd.f32 %v226_v16, %v221_v17 }
 0x1d9   :  { %230 = vst.msk [vmem:[%s378_s5] sm:$0xf] %vm229_vm6, %v228_v18 }
 0x1dc   :  { %v222_v19 = vpop.f32.mrf.mxu2 }

</bundles_post_ra>
